<compile_context>
chip_gen: v5e
topology: v5e:2x2
jax: 0.10.0
libtpu: 0.0.40
codegen_flags: <defaults>
</compile_context>

<pallas_src>
import functools

import jax
import jax.numpy as jnp
from jax.experimental import pallas as pl
from jax.experimental.pallas import tpu as pltpu


def _dqn_kernel(x_ref, w1_ref, b1_ref, w2_ref, b2_ref, w3_ref, b3_ref, o_ref):
    x = x_ref[...]                                   # (2, TB)   feature-major, lane-dense batch

    # fc1 + ReLU on the MXU (f32 accumulation).  K=2 is tiny but the MXU is
    # otherwise idle and this removes ~80 VPU elem-ops per batch element.
    h1 = jnp.dot(w1_ref[...], x, preferred_element_type=jnp.float32) + b1_ref[...]
    h1 = jnp.maximum(h1, 0.0)                        # (16, TB)

    # fc2 + ReLU on the MXU.
    h2 = jnp.dot(w2_ref[...], h1, preferred_element_type=jnp.float32) + b2_ref[...]
    h2 = jnp.maximum(h2, 0.0)                        # (16, TB)

    # fc3 (no activation).
    o = jnp.dot(w3_ref[...], h2, preferred_element_type=jnp.float32) + b3_ref[...]
    o_ref[...] = o.astype(o_ref.dtype)               # (3, TB)  unmasked lane-dense store


def _round_up(n, m):
    return ((n + m - 1) // m) * m


@functools.partial(jax.jit, static_argnames=("tb",))
def dqn_forward_fm(x_fm, params, tb=32768):
    """Feature-major entry point.  x_fm: (2, B) float32 -> (3, B) float32 Q-values."""
    B = x_fm.shape[1]

    # Batch tile: 128-lane aligned, capped at `tb`, and capped at ~half the batch
    # so there are >= 2 grid steps (lets v7x's two TensorCores split the grid).
    half = -(-B // 2)                                  # cdiv(B, 2)
    tb_eff = min(tb, max(128, _round_up(half, 128)))
    b_pad = _round_up(B, tb_eff)

    # Single fused pad (no zeros + scatter round trip).
    xt = jnp.pad(x_fm.astype(jnp.float32), ((0, 0), (0, b_pad - B)))

    # Weights keep their PyTorch (out, in) shapes; biases become (out, 1) columns.
    w1 = params["w1"]                  # (16, 2)
    w2 = params["w2"]                  # (16, 16)
    w3 = params["w3"]                  # (3, 16)
    b1 = params["b1"].reshape(-1, 1)   # (16, 1)
    b2 = params["b2"].reshape(-1, 1)   # (16, 1)
    b3 = params["b3"].reshape(-1, 1)   # (3, 1)

    # Resident operands: constant index_map -> DMA'd once, kept in VMEM.
    resident = lambda shape: pl.BlockSpec(shape, lambda i: (0, 0))

    out_fm = pl.pallas_call(
        _dqn_kernel,
        out_shape=jax.ShapeDtypeStruct((3, b_pad), jnp.float32),
        grid=(b_pad // tb_eff,),
        in_specs=[
            pl.BlockSpec((2, tb_eff), lambda i: (0, i)),   # x tile, pipelined
            resident(w1.shape), resident(b1.shape),
            resident(w2.shape), resident(b2.shape),
            resident(w3.shape), resident(b3.shape),
        ],
        out_specs=pl.BlockSpec((3, tb_eff), lambda i: (0, i)),
        compiler_params=pltpu.CompilerParams(
            dimension_semantics=("parallel",)),
    )(xt, w1, b1, w2, b2, w3, b3)

    return out_fm[:, :B]               # (3, B)


@functools.partial(jax.jit, static_argnames=("tb",))
def dqn_forward(x, params, tb=32768):
    """PyTorch-layout entry point.  x: (B, 2) float32 -> (B, 3) float32 Q-values."""
    return dqn_forward_fm(x.T, params, tb=tb).T


def init_params(key):
    """Deterministic init mimicking nn.Linear's default U(-1/sqrt(fan_in), 1/sqrt(fan_in))."""
    def linear(key, fan_in, fan_out):
        kw, kb = jax.random.split(key)
        bound = 1.0 / (fan_in ** 0.5)
        w = jax.random.uniform(kw, (fan_out, fan_in), jnp.float32, -bound, bound)
        b = jax.random.uniform(kb, (fan_out,), jnp.float32, -bound, bound)
        return w, b

    k1, k2, k3 = jax.random.split(key, 3)
    w1, b1 = linear(k1, 2, 16)
    w2, b2 = linear(k2, 16, 16)
    w3, b3 = linear(k3, 16, 3)
    return {"w1": w1, "b1": b1, "w2": w2, "b2": b2, "w3": w3, "b3": b3}


def dqn_reference(x, p):
    h = jnp.maximum(x @ p["w1"].T + p["b1"], 0.0)
    h = jnp.maximum(h @ p["w2"].T + p["b2"], 0.0)
    return h @ p["w3"].T + p["b3"]


if __name__ == "__main__":
    key = jax.random.PRNGKey(0)
    kp, kx1, kx2 = jax.random.split(key, 3)
    params = init_params(kp)

    # Small batch: single padded 128-lane tile, one grid step.
    x_small = jax.random.normal(kx1, (8, 2), jnp.float32)
    out_small = jax.block_until_ready(dqn_forward(x_small, params))
    ref_small = dqn_reference(x_small, params)
    assert out_small.shape == (8, 3), out_small.shape
    assert jnp.allclose(out_small, ref_small, atol=2e-5, rtol=1e-4), (out_small, ref_small)

    # Medium non-multiple batch: tb_eff caps at round_up(cdiv(500,2),128)=256,
    # so 2 grid steps (exercises weight residency, pipelining, padded final tile,
    # and the v7x two-core grid split).
    x_big = jax.random.normal(kx2, (500, 2), jnp.float32)
    out_big = jax.block_until_ready(dqn_forward(x_big, params))
    ref_big = dqn_reference(x_big, params)
    assert out_big.shape == (500, 3), out_big.shape
    assert jnp.allclose(out_big, ref_big, atol=2e-5, rtol=1e-4), (out_big, ref_big)

    # Feature-major API (no wrapper transposes) gives identical results.
    out_fm = jax.block_until_ready(dqn_forward_fm(x_big.T, params))
    assert jnp.allclose(out_fm.T, ref_big, atol=2e-5, rtol=1e-4)

    print("KERNEL_OK")
</pallas_src>

<mosaic_0001>
module attributes {stable_mosaic.version = 11 : i64} {
  func.func @_dqn_kernel(%arg0: i32, %arg1: memref<2x128xf32, #tpu.memory_space<vmem>>, %arg2: memref<16x2xf32, #tpu.memory_space<vmem>>, %arg3: memref<16x1xf32, #tpu.memory_space<vmem>>, %arg4: memref<16x16xf32, #tpu.memory_space<vmem>>, %arg5: memref<16x1xf32, #tpu.memory_space<vmem>>, %arg6: memref<3x16xf32, #tpu.memory_space<vmem>>, %arg7: memref<3x1xf32, #tpu.memory_space<vmem>>, %arg8: memref<3x128xf32, #tpu.memory_space<vmem>>) attributes {dimension_semantics = [#tpu.dimension_semantics<parallel>], iteration_bounds = array<i64: 1>, scalar_prefetch = 0 : i64, scratch_operands = 0 : i64, tpu.core_type = #tpu.core_type<tc>, window_params = [{transform_indices = @transform_0, window_bounds = array<i64: 2, 128>}, {pipeline_mode = #tpu.pipeline_mode<synchronous>, transform_indices = @transform_1, window_bounds = array<i64: 16, 2>}, {pipeline_mode = #tpu.pipeline_mode<synchronous>, transform_indices = @transform_2, window_bounds = array<i64: 16, 1>}, {pipeline_mode = #tpu.pipeline_mode<synchronous>, transform_indices = @transform_3, window_bounds = array<i64: 16, 16>}, {pipeline_mode = #tpu.pipeline_mode<synchronous>, transform_indices = @transform_4, window_bounds = array<i64: 16, 1>}, {pipeline_mode = #tpu.pipeline_mode<synchronous>, transform_indices = @transform_5, window_bounds = array<i64: 3, 16>}, {pipeline_mode = #tpu.pipeline_mode<synchronous>, transform_indices = @transform_6, window_bounds = array<i64: 3, 1>}, {transform_indices = @transform_7, window_bounds = array<i64: 3, 128>}]} {
    %c0 = arith.constant 0 : index
    %c0_0 = arith.constant 0 : index
    %0 = vector.load %arg1[%c0, %c0_0] : memref<2x128xf32, #tpu.memory_space<vmem>>, vector<2x128xf32>
    %c0_1 = arith.constant 0 : index
    %c0_2 = arith.constant 0 : index
    %1 = vector.load %arg2[%c0_1, %c0_2] : memref<16x2xf32, #tpu.memory_space<vmem>>, vector<16x2xf32>
    %cst = arith.constant dense<0.000000e+00> : vector<16x128xf32>
    %2 = tpu.matmul %1, %0, %cst {dimension_numbers = #tpu.dot_dimension_numbers<[1], [0], [0], [1], [0, 0, 1, 1], [], []>} : vector<16x2xf32>, vector<2x128xf32>, vector<16x128xf32> -> vector<16x128xf32>
    %c0_3 = arith.constant 0 : index
    %c0_4 = arith.constant 0 : index
    %3 = vector.load %arg3[%c0_3, %c0_4] : memref<16x1xf32, #tpu.memory_space<vmem>>, vector<16x1xf32>
    %4 = vector.broadcast %3 : vector<16x1xf32> to vector<16x128xf32>
    %5 = arith.addf %2, %4 : vector<16x128xf32>
    %cst_5 = arith.constant 0.000000e+00 : f32
    %6 = vector.broadcast %cst_5 : f32 to vector<16x128xf32>
    %7 = arith.maximumf %5, %6 : vector<16x128xf32>
    %c0_6 = arith.constant 0 : index
    %c0_7 = arith.constant 0 : index
    %8 = vector.load %arg4[%c0_6, %c0_7] : memref<16x16xf32, #tpu.memory_space<vmem>>, vector<16x16xf32>
    %cst_8 = arith.constant dense<0.000000e+00> : vector<16x128xf32>
    %9 = tpu.matmul %8, %7, %cst_8 {dimension_numbers = #tpu.dot_dimension_numbers<[1], [0], [0], [1], [0, 0, 1, 1], [], []>} : vector<16x16xf32>, vector<16x128xf32>, vector<16x128xf32> -> vector<16x128xf32>
    %c0_9 = arith.constant 0 : index
    %c0_10 = arith.constant 0 : index
    %10 = vector.load %arg5[%c0_9, %c0_10] : memref<16x1xf32, #tpu.memory_space<vmem>>, vector<16x1xf32>
    %11 = vector.broadcast %10 : vector<16x1xf32> to vector<16x128xf32>
    %12 = arith.addf %9, %11 : vector<16x128xf32>
    %cst_11 = arith.constant 0.000000e+00 : f32
    %13 = vector.broadcast %cst_11 : f32 to vector<16x128xf32>
    %14 = arith.maximumf %12, %13 : vector<16x128xf32>
    %c0_12 = arith.constant 0 : index
    %c0_13 = arith.constant 0 : index
    %15 = vector.load %arg6[%c0_12, %c0_13] : memref<3x16xf32, #tpu.memory_space<vmem>>, vector<3x16xf32>
    %cst_14 = arith.constant dense<0.000000e+00> : vector<3x128xf32>
    %16 = tpu.matmul %15, %14, %cst_14 {dimension_numbers = #tpu.dot_dimension_numbers<[1], [0], [0], [1], [0, 0, 1, 1], [], []>} : vector<3x16xf32>, vector<16x128xf32>, vector<3x128xf32> -> vector<3x128xf32>
    %c0_15 = arith.constant 0 : index
    %c0_16 = arith.constant 0 : index
    %17 = vector.load %arg7[%c0_15, %c0_16] : memref<3x1xf32, #tpu.memory_space<vmem>>, vector<3x1xf32>
    %18 = vector.broadcast %17 : vector<3x1xf32> to vector<3x128xf32>
    %19 = arith.addf %16, %18 : vector<3x128xf32>
    %c0_17 = arith.constant 0 : index
    %c0_18 = arith.constant 0 : index
    %20 = vector.load %arg8[%c0_17, %c0_18] : memref<3x128xf32, #tpu.memory_space<vmem>>, vector<3x128xf32>
    tpu.vector_store %arg8[%c0_17, %c0_18], %19 {strides = array<i32>} : memref<3x128xf32, #tpu.memory_space<vmem>>, vector<3x128xf32>,
    return
  }
  func.func @transform_0(%arg0: i32) -> (i32, i32) {
    %c0_i32 = arith.constant 0 : i32
    %c0_i32_0 = arith.constant 0 : i32
    return %c0_i32, %arg0 : i32, i32
  }
  func.func @transform_1(%arg0: i32) -> (i32, i32) {
    %c0_i32 = arith.constant 0 : i32
    %c0_i32_0 = arith.constant 0 : i32
    %c0_i32_1 = arith.constant 0 : i32
    return %c0_i32, %c0_i32_0 : i32, i32
  }
  func.func @transform_2(%arg0: i32) -> (i32, i32) {
    %c0_i32 = arith.constant 0 : i32
    %c0_i32_0 = arith.constant 0 : i32
    %c0_i32_1 = arith.constant 0 : i32
    return %c0_i32, %c0_i32_0 : i32, i32
  }
  func.func @transform_3(%arg0: i32) -> (i32, i32) {
    %c0_i32 = arith.constant 0 : i32
    %c0_i32_0 = arith.constant 0 : i32
    %c0_i32_1 = arith.constant 0 : i32
    return %c0_i32, %c0_i32_0 : i32, i32
  }
  func.func @transform_4(%arg0: i32) -> (i32, i32) {
    %c0_i32 = arith.constant 0 : i32
    %c0_i32_0 = arith.constant 0 : i32
    %c0_i32_1 = arith.constant 0 : i32
    return %c0_i32, %c0_i32_0 : i32, i32
  }
  func.func @transform_5(%arg0: i32) -> (i32, i32) {
    %c0_i32 = arith.constant 0 : i32
    %c0_i32_0 = arith.constant 0 : i32
    %c0_i32_1 = arith.constant 0 : i32
    return %c0_i32, %c0_i32_0 : i32, i32
  }
  func.func @transform_6(%arg0: i32) -> (i32, i32) {
    %c0_i32 = arith.constant 0 : i32
    %c0_i32_0 = arith.constant 0 : i32
    %c0_i32_1 = arith.constant 0 : i32
    return %c0_i32, %c0_i32_0 : i32, i32
  }
  func.func @transform_7(%arg0: i32) -> (i32, i32) {
    %c0_i32 = arith.constant 0 : i32
    %c0_i32_0 = arith.constant 0 : i32
    return %c0_i32, %arg0 : i32, i32
  }
}

</mosaic_0001>

<bundles_post_ra>
// kernel: dqn_forward_fm.1
= control target key start
LH: loop header
LB: loop body
LE: loop exit
PB: predicated region body
PF: predicated region fallthrough
CT: control target
= control target key end

     0   :  { %vm49_vm0 = vcmask 1041408   ;;  %vm42_vm1 = vcmask 15360   ;;  %v210_v2 = vmov 0   ;;  %s291_s0 = inlined_call_operand.vmem [shape: f32[2,128], index: 0, kind: input, shape index: {}]   ;;  %s292_s1 = inlined_call_operand.vmem [shape: f32[16,2], index: 1, kind: input, shape index: {}]   ;;  %s293_s2 = inlined_call_operand.vmem [shape: f32[16,1], index: 2, kind: input, shape index: {}]   ;;  %s294_s3 = inlined_call_operand.vmem [shape: f32[16,16], index: 3, kind: input, shape index: {}]   ;;  %s295_s4 = inlined_call_operand.vmem [shape: f32[16,1], index: 4, kind: input, shape index: {}]   ;;  %s296_s5 = inlined_call_operand.vmem [shape: f32[3,16], index: 5, kind: input, shape index: {}]   ;;  %s297_s6 = inlined_call_operand.vmem [shape: f32[3,1], index: 6, kind: input, shape index: {}]   ;;  %s298_s7 = inlined_call_operand.hbm [shape: f32[3,128], index: 7, kind: output, shape index: {}]  }
   0x1   :  { %v27_v0 = vld [vmem:[%s291_s0] sm:$0x3]  ;;  %181 = vset.pattern.permute.xlu0 %v210_v2  ;;  %v31_v3 = vld [vmem:[%s293_s2 + $0x8] sm:$0xff] }
   0x2   :  { %v28_v1 = vld [vmem:[%s292_s1] sm:$0xff]  ;;  %171 = vmatpush.msk.msra.mxu0 %vm49_vm0, %v27_v0  ;;  %39 = vperm.xlu0 %181, %v31_v3  }
   0x3   :  { %172 = vmatmul.msk.f32.vlgmr.msra.gmra.mxu0 %vm42_vm1, %v28_v1 }
   0x4   :  { %12 = vsyncpa [#allocation3], 0  ;;  %182 = vset.pattern.permute.xlu1 %v210_v2  ;;  %183 = vset.pattern.permute.xlu2 %v210_v2  ;;  %v29_v4 = vld [vmem:[%s292_s1 + $0x8] sm:$0xff]  ;;  %v30_v5 = vld [vmem:[%s293_s2] sm:$0xff]  ;;  %vm92_vm2 = vcmask 130048   ;;  %s211_s18 = smov [#allocation2]  }
   0x5   :  { %v81_v6 = vld [vmem:[%s295_s4 + $0x8] sm:$0xff]  ;;  %v80_v7 = vld [vmem:[%s295_s4] sm:$0xff]  ;;  %s162_s21 = sshll.u32 %s298_s7, 4  ;;  %s163_s21 = int_to_ptr.hbm [resolvable:$true] %s162_s21 }
   0x6   :  { %89 = vperm.xlu1 %182, %v81_v6   ;;  %v78_v16 = vld [vmem:[%s294_s3] sm:$0xff]  ;;  %v79_v17 = vld [vmem:[%s294_s3 + $0x8] sm:$0xff] }
   0x7   :  { %v125_v18 = vld [vmem:[%s297_s6] sm:$0x7]  ;;  %s160_s6 = sshll.u32 %s211_s18, 4  ;;  %s161_s6 = int_to_ptr.vmem [resolvable:$true] %s160_s6 }
   0x8   :  { %128 = vperm.xlu2 %183, %v125_v18   ;;  %v124_v27 = vld [vmem:[%s296_s5] sm:$0x7] }
   0xa   :  { %34 = vperm.xlu0 %181, %v30_v5  }
   0xb   :  { %173 = vmatmul.msk.f32.gmra.mxu0 %vm42_vm1, %v29_v4 }
   0xe   :  { %84 = vperm.xlu1 %182, %v80_v7  }
  0x62   :  { %v129_v28 = vpop.permute.xlu2 %128 }
  0x74   :  { %v40_v8 = vpop.permute.xlu0 %39 }
  0x78   :  { %v90_v19 = vpop.permute.xlu1 %89 }
  0x7c   :  { %v35_v10 = vpop.permute.xlu0 %34 }
  0x80   :  { %v70_v9 = vpop.f32.mrf.mxu0  ;;  %v85_v20 = vpop.permute.xlu1 %84 }
  0x81   :  { %v71_v12 = vadd.f32 %v70_v9, %v35_v10 }
  0x83   :  { %v76_v15 = vmax.f32 %v71_v12, 0.0 }
  0x88   :  { %v73_v11 = vpop.f32.mrf.mxu0 }
  0x89   :  { %v74_v13 = vadd.f32 %v73_v11, %v40_v8 }
  0x8b   :  { %v77_v14 = vmax.f32 %v74_v13, 0.0 }
  0x8d   :  { %113 = vmatpush.msra.mxu1 %v77_v14  ;;  %177 = vmatpush.msra.mxu3 %v77_v14 }
  0x8f   :  { %114 = vmatpush.msra.mxu1 %v76_v15  ;;  %178 = vmatpush.msra.mxu3 %v76_v15 }
  0x90   :  { %174 = vmatmul.msk.f32.vlgmr.msra.gmra.mxu1 %vm92_vm2, %v78_v16  ;;  %175 = vmatmul.msk.f32.vlgmr.msra.gmra.mxu3 %vm92_vm2, %v79_v17 }
 0x10d   :  { %v116_v21 = vpop.f32.mrf.mxu1 }
 0x10e   :  { %v117_v23 = vadd.f32 %v116_v21, %v85_v20 }
 0x110   :  { %v122_v26 = vmax.f32 %v117_v23, 0.0 }
 0x113   :  { %v119_v22 = vpop.f32.mrf.mxu3 }
 0x114   :  { %v120_v24 = vadd.f32 %v119_v22, %v90_v19 }
 0x116   :  { %v123_v25 = vmax.f32 %v120_v24, 0.0 }
 0x118   :  { %148 = vmatpush.msra.mxu2 %v123_v25 }
 0x11a   :  { %149 = vmatpush.msra.mxu2 %v122_v26 }
 0x11b   :  { %176 = vmatmul.msk.f32.vlgmr.msra.gmra.mxu2 %vm92_vm2, %v124_v27 }
 0x19e   :  { %v151_v29 = vpop.f32.mrf.mxu2 }
 0x19f   :  { %v152_v30 = vadd.f32 %v151_v29, %v129_v28 }
 0x1a1   :  { %154 = vst [vmem:[#allocation2] sm:$0x7] %v152_v30 }
 0x1a2   :  { %165 = dma.vmem_to_hbm [thread:$0]  %s161_s6, 64, %s163_s21, [#allocation3]  }
 0x1a3   :  { %208 = dma.done.wait [#allocation3], 64  }
 0x1a4   :  { %209 = vsyncadd [#allocation3], 4294967232 }
 0x1a5   :  { %170 = vsyncpa [#allocation3], 1 }

</bundles_post_ra>
